<compile_context>
chip_gen: v7x
topology: tpu7x:2x2x1
jax: 0.10.0
libtpu: 0.0.40
codegen_flags: <defaults>
</compile_context>

<pallas_src>
import functools

import jax
import jax.numpy as jnp
from jax.experimental import pallas as pl
from jax.experimental.pallas import tpu as pltpu


def _round_up(x, m):
    return ((x + m - 1) // m) * m


# ---------------------------------------------------------------------------
# Kernels
# ---------------------------------------------------------------------------
def _fused_head_kernel_2d(x_ref, w_ref, b_ref, out_ref):
    """Whole hidden dim resident: one MXU pass per (tm, tn) tile, no epilogue.

    x_ref   : (tm, H)   hidden-state row tile (resident across the vocab axis)
    w_ref   : (H,  tn)  fused [wp | wc | pad] weight tile
    b_ref   : (1,  tn)  fused [bp | bc | 0 ] bias (f32)
    out_ref : (tm, tn)  fused output tile
    """
    acc = jnp.dot(x_ref[...], w_ref[...], preferred_element_type=jnp.float32)
    out_ref[...] = (acc + b_ref[...]).astype(out_ref.dtype)


def _fused_head_kernel_3d(x_ref, w_ref, b_ref, out_ref, acc_ref):
    """K-split variant: f32 VMEM accumulator across the hidden (last) grid axis."""
    k = pl.program_id(2)

    @pl.when(k == 0)
    def _():
        acc_ref[...] = jnp.zeros_like(acc_ref)

    acc_ref[...] += jnp.dot(x_ref[...], w_ref[...],
                            preferred_element_type=jnp.float32)

    @pl.when(k == pl.num_programs(2) - 1)
    def _():
        out_ref[...] = (acc_ref[...] + b_ref[...]).astype(out_ref.dtype)


# ---------------------------------------------------------------------------
# Parameter prepack (one-time cost; hoisted out of the per-forward hot path)
# ---------------------------------------------------------------------------
def prepack_rlhf_head(wp, bp, wc, bc, *, tn=1024, tk_max=4096,
                      compute_dtype=jnp.bfloat16):
    """Fuse [policy | critic] head weights/biases, pad, cast. Call once.

    Returns (w_fused [H_pad, N_pad], b_fused [1, N_pad] f32, meta dict).
    """
    H, V = wp.shape
    Nc = V + 1                                    # vocab columns + 1 critic column

    tn = min(tn, _round_up(Nc, 256))              # 256-aligned for v6e/v7x 2x256 MXU
    N_pad = _round_up(Nc, tn)

    if H <= tk_max:
        tk = H                                    # whole hidden dim resident → 2-D grid
        H_pad = H
    else:
        tk = _round_up(tk_max, 256) if tk_max % 256 else tk_max
        H_pad = _round_up(H, tk)

    w = jnp.concatenate([wp, wc.reshape(H, 1)], axis=1)        # [H, V+1]
    w = jnp.pad(w, ((0, H_pad - H), (0, N_pad - Nc)))
    if compute_dtype is not None:
        w = w.astype(compute_dtype)

    b = jnp.concatenate([bp.reshape(-1), bc.reshape(-1)])      # [V+1]
    b = jnp.pad(b, (0, N_pad - Nc)).reshape(1, N_pad).astype(jnp.float32)

    meta = dict(V=V, H=H, Nc=Nc, tn=tn, tk=tk, H_pad=H_pad, N_pad=N_pad,
                compute_dtype=compute_dtype)
    return w, b, meta


# ---------------------------------------------------------------------------
# Forward
# ---------------------------------------------------------------------------
def rlhf_forward_prepacked(x, w, b, meta, *, tm=512, out_dtype=None,
                           weight_buffers=2,
                           vmem_limit_bytes=56 * 1024 * 1024):
    """x: [B, S, H] -> (policy_logits [B, S, V], values [B, S, 1])."""
    B, S, H = x.shape
    assert H == meta["H"], "hidden dim mismatch with prepacked head"
    V, Nc = meta["V"], meta["Nc"]
    tn, tk = meta["tn"], meta["tk"]
    H_pad, N_pad = meta["H_pad"], meta["N_pad"]
    compute_dtype = meta["compute_dtype"]
    out_dtype = out_dtype or x.dtype

    M = B * S
    # dtype-aware sublane rounding: bf16 packs 2 rows/sublane → 16-row multiples.
    cdt = jnp.dtype(compute_dtype) if compute_dtype is not None else jnp.dtype(x.dtype)
    row_align = 16 if cdt.itemsize == 2 else 8
    tm = min(tm, _round_up(M, row_align))
    M_pad = _round_up(M, tm)

    x2 = x.reshape(M, H)
    if compute_dtype is not None:
        x2 = x2.astype(compute_dtype)
    x2 = jnp.pad(x2, ((0, M_pad - M), (0, H_pad - H)))

    cost = pl.CostEstimate(
        flops=2 * M_pad * H_pad * N_pad,
        transcendentals=0,
        bytes_accessed=(x2.size * x2.dtype.itemsize
                        + w.size * w.dtype.itemsize
                        + b.size * b.dtype.itemsize
                        + M_pad * N_pad * jnp.dtype(out_dtype).itemsize),
    )

    if H_pad <= tk:
        # ---- 2-D grid: K collapsed; x row-tile is DMA'd once per i, reused
        # across the whole vocab axis (j innermost). No accumulator scratch. ----
        grid = (M_pad // tm, N_pad // tn)
        out = pl.pallas_call(
            _fused_head_kernel_2d,
            out_shape=jax.ShapeDtypeStruct((M_pad, N_pad), out_dtype),
            grid_spec=pltpu.PrefetchScalarGridSpec(
                num_scalar_prefetch=0,
                grid=grid,
                in_specs=[
                    pl.BlockSpec((tm, H_pad), lambda i, j: (i, 0)),   # x row tile
                    pl.BlockSpec((H_pad, tn), lambda i, j: (0, j)),   # fused weight
                    pl.BlockSpec((1, tn), lambda i, j: (0, j)),       # fused bias
                ],
                out_specs=pl.BlockSpec((tm, tn), lambda i, j: (i, j)),
            ),
            compiler_params=pltpu.CompilerParams(
                dimension_semantics=("parallel", "parallel"),
                vmem_limit_bytes=vmem_limit_bytes,
            ),
            cost_estimate=cost,
        )(x2, w, b)
    else:
        # ---- 3-D grid: hidden dim split, f32 accumulator, reduction innermost. ----
        w_spec_kwargs = {}
        if weight_buffers and weight_buffers > 2:
            # Deeper weight pipelining (useful on v5e's slower HBM).
            w_spec_kwargs["pipeline_mode"] = pl.Buffered(weight_buffers)

        grid = (M_pad // tm, N_pad // tn, H_pad // tk)
        out = pl.pallas_call(
            _fused_head_kernel_3d,
            out_shape=jax.ShapeDtypeStruct((M_pad, N_pad), out_dtype),
            grid_spec=pltpu.PrefetchScalarGridSpec(
                num_scalar_prefetch=0,
                grid=grid,
                in_specs=[
                    pl.BlockSpec((tm, tk), lambda i, j, k: (i, k)),
                    pl.BlockSpec((tk, tn), lambda i, j, k: (k, j), **w_spec_kwargs),
                    pl.BlockSpec((1, tn), lambda i, j, k: (0, j)),
                ],
                out_specs=pl.BlockSpec((tm, tn), lambda i, j, k: (i, j)),
                scratch_shapes=[pltpu.VMEM((tm, tn), jnp.float32)],
            ),
            compiler_params=pltpu.CompilerParams(
                dimension_semantics=("parallel", "parallel", "arbitrary"),
                vmem_limit_bytes=vmem_limit_bytes,
            ),
            cost_estimate=cost,
        )(x2, w, b)

    # Columns [0, V) are the policy logits, column V is the per-token critic
    # value (only_last=False semantics).
    logits = out[:M, :V].reshape(B, S, V)
    values = out[:M, V:V + 1].reshape(B, S, 1)
    return logits, values
    # TODO(synk): train()/eval() mode switching in the wrapper is host-side
    # bookkeeping with no computation; nothing to lower to a kernel.


def rlhf_forward(x, wp, bp, wc, bc, *, compute_dtype=jnp.bfloat16, **kwargs):
    """One-off convenience (prepacks the head every call).

    For training loops, call prepack_rlhf_head() once and use
    rlhf_forward_prepacked() to avoid re-materializing the fused weight.
    """
    prepack_kwargs = {k: kwargs.pop(k) for k in ("tn", "tk_max") if k in kwargs}
    w, b, meta = prepack_rlhf_head(wp, bp, wc, bc, compute_dtype=compute_dtype,
                                   **prepack_kwargs)
    return rlhf_forward_prepacked(x, w, b, meta, **kwargs)


if __name__ == "__main__":
    # Small shapes consistent with a decoder RLHF forward.
    B, S, H, V = 2, 8, 32, 128

    key = jax.random.PRNGKey(0)
    k_x, k_wp, k_bp, k_wc, k_bc = jax.random.split(key, 5)

    x = jax.random.normal(k_x, (B, S, H), dtype=jnp.float32)
    # Deterministic parameter init (synthetic; no checkpoint load).
    wp = jax.random.normal(k_wp, (H, V), dtype=jnp.float32) * (1.0 / H ** 0.5)
    bp = jax.random.normal(k_bp, (V,), dtype=jnp.float32) * 0.01
    wc = jax.random.normal(k_wc, (H, 1), dtype=jnp.float32) * (1.0 / H ** 0.5)
    bc = jax.random.normal(k_bc, (1,), dtype=jnp.float32) * 0.01

    # Pure-JAX reference (wrapper semantics: both heads on the same input).
    ref_logits = jnp.einsum("bsh,hv->bsv", x, wp) + bp
    ref_values = jnp.einsum("bsh,ho->bso", x, wc) + bc

    # --- f32 compute path: tight correctness check ---------------------------
    w32, b32, meta32 = prepack_rlhf_head(wp, bp, wc, bc, compute_dtype=None)
    fwd32 = jax.jit(functools.partial(rlhf_forward_prepacked, meta=meta32))
    logits32, values32 = fwd32(x, w32, b32)
    jax.block_until_ready((logits32, values32))
    assert logits32.shape == (B, S, V) and values32.shape == (B, S, 1)
    assert jnp.allclose(logits32, ref_logits, atol=1e-4, rtol=1e-4)
    assert jnp.allclose(values32, ref_values, atol=1e-4, rtol=1e-4)

    # --- default bf16 compute path (f32 accumulation): production config ------
    wbf, bbf, metabf = prepack_rlhf_head(wp, bp, wc, bc)   # bf16 fused weight, once
    fwdbf = jax.jit(functools.partial(rlhf_forward_prepacked, meta=metabf))
    logits, values = fwdbf(x, wbf, bbf)
    jax.block_until_ready((logits, values))
    assert logits.shape == (B, S, V) and values.shape == (B, S, 1)
    assert jnp.allclose(logits, ref_logits, atol=5e-2, rtol=5e-2)
    assert jnp.allclose(values, ref_values, atol=5e-2, rtol=5e-2)

    print("KERNEL_OK")
</pallas_src>

<mosaic_0001>
module attributes {stable_mosaic.version = 11 : i64} {
  func.func @_fused_head_kernel_2d(%arg0: i32, %arg1: i32, %arg2: memref<16x32xf32, #tpu.memory_space<vmem>>, %arg3: memref<32x256xf32, #tpu.memory_space<vmem>>, %arg4: memref<1x256xf32, #tpu.memory_space<vmem>>, %arg5: memref<16x256xf32, #tpu.memory_space<vmem>>) attributes {dimension_semantics = [#tpu.dimension_semantics<parallel>, #tpu.dimension_semantics<parallel>], iteration_bounds = array<i64: 1, 1>, scalar_prefetch = 0 : i64, scratch_operands = 0 : i64, tpu.core_type = #tpu.core_type<tc>, window_params = [{transform_indices = @transform_0, window_bounds = array<i64: 16, 32>}, {transform_indices = @transform_1, window_bounds = array<i64: 32, 256>}, {transform_indices = @transform_2, window_bounds = array<i64: 1, 256>}, {transform_indices = @transform_3, window_bounds = array<i64: 16, 256>}]} {
    %c0 = arith.constant 0 : index
    %c0_0 = arith.constant 0 : index
    %0 = vector.load %arg2[%c0, %c0_0] : memref<16x32xf32, #tpu.memory_space<vmem>>, vector<16x32xf32>
    %c0_1 = arith.constant 0 : index
    %c0_2 = arith.constant 0 : index
    %1 = vector.load %arg3[%c0_1, %c0_2] : memref<32x256xf32, #tpu.memory_space<vmem>>, vector<32x256xf32>
    %cst = arith.constant dense<0.000000e+00> : vector<16x256xf32>
    %2 = tpu.matmul %0, %1, %cst {dimension_numbers = #tpu.dot_dimension_numbers<[1], [0], [0], [1], [0, 0, 1, 1], [], []>} : vector<16x32xf32>, vector<32x256xf32>, vector<16x256xf32> -> vector<16x256xf32>
    %c0_3 = arith.constant 0 : index
    %c0_4 = arith.constant 0 : index
    %3 = vector.load %arg4[%c0_3, %c0_4] : memref<1x256xf32, #tpu.memory_space<vmem>>, vector<1x256xf32>
    %4 = vector.broadcast %3 : vector<1x256xf32> to vector<16x256xf32>
    %5 = arith.addf %2, %4 : vector<16x256xf32>
    %c0_5 = arith.constant 0 : index
    %c0_6 = arith.constant 0 : index
    %6 = vector.load %arg5[%c0_5, %c0_6] : memref<16x256xf32, #tpu.memory_space<vmem>>, vector<16x256xf32>
    tpu.vector_store %arg5[%c0_5, %c0_6], %5 {strides = array<i32>} : memref<16x256xf32, #tpu.memory_space<vmem>>, vector<16x256xf32>,
    return
  }
  func.func @transform_0(%arg0: i32, %arg1: i32) -> (i32, i32) {
    %c0_i32 = arith.constant 0 : i32
    %c0_i32_0 = arith.constant 0 : i32
    return %arg0, %c0_i32 : i32, i32
  }
  func.func @transform_1(%arg0: i32, %arg1: i32) -> (i32, i32) {
    %c0_i32 = arith.constant 0 : i32
    %c0_i32_0 = arith.constant 0 : i32
    return %c0_i32, %arg1 : i32, i32
  }
  func.func @transform_2(%arg0: i32, %arg1: i32) -> (i32, i32) {
    %c0_i32 = arith.constant 0 : i32
    %c0_i32_0 = arith.constant 0 : i32
    return %c0_i32, %arg1 : i32, i32
  }
  func.func @transform_3(%arg0: i32, %arg1: i32) -> (i32, i32) {
    %c0_i32 = arith.constant 0 : i32
    return %arg0, %arg1 : i32, i32
  }
}

</mosaic_0001>

<bundles_post_ra>
// kernel: rlhf_forward_prepacked.1
= control target key start
LH: loop header
LB: loop body
LE: loop exit
PB: predicated region body
PF: predicated region fallthrough
CT: control target
= control target key end

     0   :  { %8 = vsyncpa [#allocation3], 0  ;;  %s293_s0 = inlined_call_operand.hbm [shape: f32[16,32], index: 0, kind: input, shape index: {}]   ;;  %s294_s1 = inlined_call_operand.hbm [shape: f32[32,256], index: 1, kind: input, shape index: {}]   ;;  %s295_s2 = inlined_call_operand.vmem [shape: f32[1,256], index: 2, kind: input, shape index: {}]   ;;  %s296_s3 = inlined_call_operand.vmem [shape: f32[16,256], index: 3, kind: output, shape index: {}]  }
   0x1   :  { %9 = vsyncpa [#allocation5], 0  ;;  %s227_s12 = smov [#allocation2]   ;;  %s179_s16 = scalar_lea.hbm %s293_s0, 256 }
   0x2   :  { %s15_s13 = sshll.u32 %s227_s12, 4  ;;  %p180_p0 = scmp.ne.s32.totalorder %s293_s0, %s179_s16  ;;  %s16_s13 = int_to_ptr.vmem [resolvable:$true] %s15_s13 }
   0x3   :  { %p183_p1 = scmp.lt.u32.totalorder %s179_s16, %s293_s0 }
   0x5   :  { %p185_p2 = pnand %p183_p1, %p180_p0 }
   0x7   :  { %188 = shalt.err (!%p185_p2)
}
   0x8   :  { %s189_s21 = scalar_lea.vmem %s16_s13, 256  ;;  %p194_p4 = scmp.lt.s32.totalorder %s16_s13, %s16_s13 }
   0x9   :  { %p190_p3 = scmp.ne.s32.totalorder %s16_s13, %s189_s21  ;;  %p195_p5 = scmp.lt.s32.totalorder %s189_s21, %s189_s21 }
   0xb   :  { %p196_p6 = por %p195_p5, %p194_p4 }
   0xd   :  { %p197_p7 = pnand %p196_p6, %p190_p3 }
   0xf   :  { %200 = shalt.err (!%p197_p7)
}
  0x10   :  { %s228_s22 = smov 128   ;;  %s229_s23 = smov 8  }
  0x11   :  { %21 = dma.hbm_to_vmem [thread:$0]  %s293_s0, 256, %s16_s13, [#allocation3], %s228_s22, %s228_s22, %s229_s23  }
  0x12   :  { %s230_s26 = smov [#allocation4]   ;;  %s201_s30 = scalar_lea.hbm %s294_s1, 1024 }
  0x13   :  { %s27_s27 = sshll.u32 %s230_s26, 4  ;;  %p202_p8 = scmp.ne.s32.totalorder %s294_s1, %s201_s30  ;;  %s28_s27 = int_to_ptr.vmem [resolvable:$true] %s27_s27 }
  0x14   :  { %p205_p9 = scmp.lt.u32.totalorder %s201_s30, %s294_s1 }
  0x16   :  { %p207_p10 = pnand %p205_p9, %p202_p8 }
  0x18   :  { %210 = shalt.err (!%p207_p10)
}
  0x19   :  { %s211_s8 = scalar_lea.vmem %s28_s27, 1024  ;;  %p216_p12 = scmp.lt.s32.totalorder %s28_s27, %s28_s27 }
  0x1a   :  { %p212_p11 = scmp.ne.s32.totalorder %s28_s27, %s211_s8  ;;  %p217_p13 = scmp.lt.s32.totalorder %s211_s8, %s211_s8 }
  0x1c   :  { %p218_p0 = por %p217_p13, %p216_p12 }
  0x1e   :  { %p219_p1 = pnand %p218_p0, %p212_p11 }
  0x20   :  { %222 = shalt.err (!%p219_p1)
}
  0x21   :  { %s231_s0 = smov 256   ;;  %s232_s9 = smov 16  }
  0x22   :  { %33 = dma.hbm_to_vmem [thread:$0]  %s294_s1, 1024, %s28_s27, [#allocation5], %s231_s0, %s231_s0, %s232_s9  }
  0x23   :  { %223 = dma.done.wait [#allocation3], 256  }
  0x24   :  { %224 = vsyncadd [#allocation3], 4294967040 }
  0x25   :  { %225 = dma.done.wait [#allocation5], 1024  }
  0x26   :  { %226 = vsyncadd [#allocation5], 4294966272  ;;  %v233_v0 = vmov 0.0   ;;  %v45_v1 = vld [vmem:[#allocation4 + $0x8] sm:$0xff]  ;;  %v47_v2 = vld [vmem:[#allocation4 + $0x18] sm:$0xff]  ;;  %vm64_vm0 = vcmask 261120   ;;  %v54_v15 = vlaneseq }
  0x27   :  { %135 = vmatprep.mubr.f32.mxu0 %v233_v0  ;;  %141 = vmatprep.mubr.f32.mxu1 %v233_v0  ;;  %v44_v3 = vld [vmem:[#allocation4] sm:$0xff]  ;;  %v160_v4 = vpack.c.bf16 %v47_v2, %v45_v1  ;;  %v46_v5 = vld [vmem:[#allocation4 + $0x10] sm:$0xff]  ;;  %v49_v6 = vld [vmem:[#allocation4 + $0x28] sm:$0xff] }
  0x28   :  { %v51_v7 = vld [vmem:[#allocation4 + $0x38] sm:$0xff]  ;;  %v162_v8 = vpack.c.bf16 %v46_v5, %v44_v3  ;;  %v48_v10 = vld [vmem:[#allocation4 + $0x20] sm:$0xff]  ;;  %v50_v11 = vld [vmem:[#allocation4 + $0x30] sm:$0xff]  ;;  %v55_v16 = vshrl.u32 %v54_v15, 7 }
  0x29   :  { %v164_v9 = vpack.c.bf16 %v51_v7, %v49_v6  ;;  %161 = vmatprep.subr.bf16.mxu0 %v160_v4  ;;  %168 = vmatprep.subr.bf16.mxu1 %v160_v4  ;;  %v166_v12 = vpack.c.bf16 %v50_v11, %v48_v10  ;;  %v42_v13 = vld [vmem:[#allocation2] sm:$0xff]  ;;  %v43_v14 = vld [vmem:[#allocation2 + $0x8] sm:$0xff] }
  0x2a   :  { %163 = vmatpush1.bf16.msra.mxu0 %v162_v8  ;;  %170 = vmatpush1.bf16.msra.mxu1 %v162_v8  ;;  %v56_v17 = vsub.s32 0, %v55_v16  ;;  %v52_v18 = vld [vmem:[%s295_s2] sm:$0x3]  ;;  %v60_v19 = vsub.s32 1, %v55_v16 }
  0x2b   :  { %165 = vmatprep.subr.bf16.mxu0 %v164_v9  ;;  %169 = vmatprep.subr.bf16.mxu1 %v164_v9 }
  0x2c   :  { %v57_v20 = vrot.slane %v52_v18, %v56_v17  ;;  %v61_v21 = vrot.slane %v52_v18, %v60_v19 }
  0x2e   :  { %167 = vmatpush1.bf16.msra.mxu0 %v166_v12  ;;  %171 = vmatpush1.bf16.msra.mxu1 %v166_v12 }
  0x31   :  { %158 = vmatmul.mubr.msk.f32.vlgmr.msra.gmra.mrb[0].mxu0 %vm64_vm0, %v42_v13  ;;  %159 = vmatmul.mubr.msk.f32.vlgmr.msra.gmra.mrb[0].mxu1 %vm64_vm0, %v43_v14 }
 0x104   :  { %v137_v22 = vpop.f32.mrb[0].mxu0  ;;  %v143_v23 = vpop.f32.mrb[0].mxu1 }
 0x105   :  { %v138_v24 = vadd.f32 %v137_v22, %v57_v20  ;;  %v144_v25 = vadd.f32 %v143_v23, %v57_v20  ;;  %v139_v26 = vpop.f32.mrb[1].mxu0  ;;  %v145_v27 = vpop.f32.mrb[1].mxu1 }
 0x106   :  { %v140_v28 = vadd.f32 %v139_v26, %v61_v21  ;;  %v146_v29 = vadd.f32 %v145_v27, %v61_v21 }
 0x107   :  { %148 = vst [vmem:[%s296_s3] sm:$0xff] %v138_v24  ;;  %150 = vst [vmem:[%s296_s3 + $0x10] sm:$0xff] %v144_v25 }
 0x108   :  { %149 = vst [vmem:[%s296_s3 + $0x8] sm:$0xff] %v140_v28  ;;  %151 = vst [vmem:[%s296_s3 + $0x18] sm:$0xff] %v146_v29 }
 0x109   :  { %156 = vsyncpa [#allocation3], 1 }
 0x10a   :  { %157 = vsyncpa [#allocation5], 1 }

</bundles_post_ra>
